<compile_context>
chip_gen: v7x
topology: tpu7x:2x2x1
jax: 0.10.0
libtpu: 0.0.40
codegen_flags: <defaults>
</compile_context>

<pallas_src>
import jax
import jax.numpy as jnp
from jax import lax
from jax.experimental import pallas as pl
from jax.experimental.pallas import tpu as pltpu


def _critic_q1_kernel(x_ref, w1_ref, b1_ref, wf_ref, bf_ref, q_ref):
    """q = relu(x @ W1 + b1) @ Wf + bf, emitted lane-dense as (1, TB)."""
    x = x_ref[...]                                                   # (TB, F)
    h = jnp.dot(x, w1_ref[...], preferred_element_type=jnp.float32)  # MXU
    h = jnp.maximum(h + b1_ref[...], 0.0)                            # (TB, H)
    # Folded (enc layer-2 ∘ dec_q1) projection. Contract H on BOTH operands so
    # the result lands with batch on the lane axis: (1, H) x (TB, H) -> (1, TB).
    q = lax.dot_general(
        wf_ref[...], h,
        dimension_numbers=(((1,), (1,)), ((), ())),
        preferred_element_type=jnp.float32,
    )
    q_ref[...] = (q + bf_ref[...]).astype(q_ref.dtype)


def _default_block_b():
    """Batch tile sized against the padded VMEM footprint (features pad to 128 lanes)."""
    try:
        vmem = pltpu.get_tpu_info().vmem_capacity_bytes
    except Exception:  # pragma: no cover - conservative fallback
        vmem = 64 << 20
    # Padded streamed block ~ TB * 128 lanes * 4 B, double-buffered: comfortably
    # inside the scoped-VMEM default at these sizes on every generation.
    return 2048 if vmem <= (64 << 20) else 4096


def critic_twin_forward(value, params, *, block_b=None):
    """CriticTwin.forward (q1 head). value: (B, state_dim+action_dim) float32."""
    w1, b1, w2, b2, wq1, bq1 = params

    # Fold the two trailing affine layers (no activation between them).
    wf_row = (w2 @ wq1).T              # (1, dims[0])
    bf = b2 @ wq1 + bq1                # (1, 1)

    B, F = value.shape
    H = w1.shape[1]

    if block_b is None:
        block_b = _default_block_b()

    if B <= block_b:
        tb, b_pad = B, B               # single tile: block == full array dims
    else:
        tb = block_b                   # multiple of 128 -> lane-dense out tiles
        b_pad = ((B + tb - 1) // tb) * tb
        if b_pad != B:
            value = jnp.pad(value, ((0, b_pad - B), (0, 0)))
    num_tiles = b_pad // tb

    def const(shape):
        # Resident (non-streamed) operand: constant block index, DMA'd once.
        return pl.BlockSpec(shape, lambda i: (0, 0))

    q_row = pl.pallas_call(
        _critic_q1_kernel,
        out_shape=jax.ShapeDtypeStruct((1, b_pad), jnp.float32),
        grid=(num_tiles,),
        in_specs=[
            pl.BlockSpec((tb, F), lambda i: (i, 0)),   # value: streamed over batch
            const((F, H)),                             # W1
            const((1, H)),                             # b1
            const((1, H)),                             # Wf (folded, transposed)
            const((1, 1)),                             # bf (folded)
        ],
        out_specs=pl.BlockSpec((1, tb), lambda i: (0, i)),  # lane-dense q slab
        compiler_params=pltpu.CompilerParams(
            dimension_semantics=("parallel",)),
    )(value, w1, b1, wf_row, bf)

    # Back to the torch layout (B, 1); drop any batch padding.
    return q_row[:, :B].T

# TODO(synk): get_q1_q2 could reuse this same kernel by stacking both folded
# heads into a (2, H) Wf / (2, 1) bf and emitting a (2, B) output; forward()
# only uses dec_q1, so a single head is implemented here.


def init_params(key, state_dim, action_dim, dims):
    """Deterministic synthetic parameters; weights are (in, out), biases (1, out)."""
    in_dim = state_dim + action_dim
    sizes = [(in_dim, dims[0]), (dims[0], dims[1]), (dims[1], 1)]
    params = []
    for (fan_in, fan_out) in sizes:
        key, kw, kb = jax.random.split(key, 3)
        bound = 1.0 / jnp.sqrt(fan_in)
        w = jax.random.uniform(kw, (fan_in, fan_out), jnp.float32, -bound, bound)
        b = jax.random.uniform(kb, (1, fan_out), jnp.float32, -bound, bound)
        params.extend([w, b])
    return tuple(params)


def reference_forward(value, params):
    w1, b1, w2, b2, wq1, bq1 = params
    h1 = jnp.maximum(value @ w1 + b1, 0.0)
    h2 = h1 @ w2 + b2
    return h2 @ wq1 + bq1


if __name__ == "__main__":
    state_dim, action_dim = 12, 4
    dims = (32, 32)

    key = jax.random.PRNGKey(0)
    params = init_params(key, state_dim, action_dim, dims)

    # --- small single-tile case (B=8) ---------------------------------------
    key, kx = jax.random.split(key)
    value = jax.random.normal(kx, (8, state_dim + action_dim), jnp.float32)
    q1 = jax.block_until_ready(critic_twin_forward(value, params))
    q1_ref = reference_forward(value, params)
    assert q1.shape == (8, 1)
    assert jnp.allclose(q1, q1_ref, atol=1e-4, rtol=1e-4), "mismatch (B=8)"

    # --- tiled + padded case: exercises the batch grid / lane-dense tiles ----
    key, kx2 = jax.random.split(key)
    value_big = jax.random.normal(kx2, (300, state_dim + action_dim), jnp.float32)
    q1_big = jax.block_until_ready(
        critic_twin_forward(value_big, params, block_b=128))
    q1_big_ref = reference_forward(value_big, params)
    assert q1_big.shape == (300, 1)
    assert jnp.allclose(q1_big, q1_big_ref, atol=1e-4, rtol=1e-4), "mismatch (B=300)"

    print("KERNEL_OK")
</pallas_src>

<mosaic_0001>
module attributes {stable_mosaic.version = 11 : i64} {
  func.func @_critic_q1_kernel(%arg0: i32, %arg1: memref<8x16xf32, #tpu.memory_space<vmem>>, %arg2: memref<16x32xf32, #tpu.memory_space<vmem>>, %arg3: memref<1x32xf32, #tpu.memory_space<vmem>>, %arg4: memref<1x32xf32, #tpu.memory_space<vmem>>, %arg5: memref<1x1xf32, #tpu.memory_space<vmem>>, %arg6: memref<1x8xf32, #tpu.memory_space<vmem>>) attributes {dimension_semantics = [#tpu.dimension_semantics<parallel>], iteration_bounds = array<i64: 1>, scalar_prefetch = 0 : i64, scratch_operands = 0 : i64, tpu.core_type = #tpu.core_type<tc>, window_params = [{transform_indices = @transform_0, window_bounds = array<i64: 8, 16>}, {pipeline_mode = #tpu.pipeline_mode<synchronous>, transform_indices = @transform_1, window_bounds = array<i64: 16, 32>}, {pipeline_mode = #tpu.pipeline_mode<synchronous>, transform_indices = @transform_2, window_bounds = array<i64: 1, 32>}, {pipeline_mode = #tpu.pipeline_mode<synchronous>, transform_indices = @transform_3, window_bounds = array<i64: 1, 32>}, {pipeline_mode = #tpu.pipeline_mode<synchronous>, transform_indices = @transform_4, window_bounds = array<i64: 1, 1>}, {transform_indices = @transform_5, window_bounds = array<i64: 1, 8>}]} {
    %c0 = arith.constant 0 : index
    %c0_0 = arith.constant 0 : index
    %0 = vector.load %arg1[%c0, %c0_0] : memref<8x16xf32, #tpu.memory_space<vmem>>, vector<8x16xf32>
    %c0_1 = arith.constant 0 : index
    %c0_2 = arith.constant 0 : index
    %1 = vector.load %arg2[%c0_1, %c0_2] : memref<16x32xf32, #tpu.memory_space<vmem>>, vector<16x32xf32>
    %cst = arith.constant dense<0.000000e+00> : vector<8x32xf32>
    %2 = tpu.matmul %0, %1, %cst {dimension_numbers = #tpu.dot_dimension_numbers<[1], [0], [0], [1], [0, 0, 1, 1], [], []>} : vector<8x16xf32>, vector<16x32xf32>, vector<8x32xf32> -> vector<8x32xf32>
    %c0_3 = arith.constant 0 : index
    %c0_4 = arith.constant 0 : index
    %3 = vector.load %arg3[%c0_3, %c0_4] : memref<1x32xf32, #tpu.memory_space<vmem>>, vector<1x32xf32>
    %4 = vector.broadcast %3 : vector<1x32xf32> to vector<8x32xf32>
    %5 = arith.addf %2, %4 : vector<8x32xf32>
    %cst_5 = arith.constant 0.000000e+00 : f32
    %6 = vector.broadcast %cst_5 : f32 to vector<8x32xf32>
    %7 = arith.maximumf %5, %6 : vector<8x32xf32>
    %c0_6 = arith.constant 0 : index
    %c0_7 = arith.constant 0 : index
    %8 = vector.load %arg4[%c0_6, %c0_7] : memref<1x32xf32, #tpu.memory_space<vmem>>, vector<1x32xf32>
    %cst_8 = arith.constant dense<0.000000e+00> : vector<1x8xf32>
    %9 = tpu.matmul %8, %7, %cst_8 {dimension_numbers = #tpu.dot_dimension_numbers<[1], [1], [0], [0], [0, 0, 1, 0], [], []>} : vector<1x32xf32>, vector<8x32xf32>, vector<1x8xf32> -> vector<1x8xf32>
    %c0_9 = arith.constant 0 : index
    %c0_10 = arith.constant 0 : index
    %10 = vector.load %arg5[%c0_9, %c0_10] : memref<1x1xf32, #tpu.memory_space<vmem>>, vector<1x1xf32>
    %11 = vector.broadcast %10 : vector<1x1xf32> to vector<1x8xf32>
    %12 = arith.addf %9, %11 : vector<1x8xf32>
    %c0_11 = arith.constant 0 : index
    %c0_12 = arith.constant 0 : index
    %13 = vector.load %arg6[%c0_11, %c0_12] : memref<1x8xf32, #tpu.memory_space<vmem>>, vector<1x8xf32>
    tpu.vector_store %arg6[%c0_11, %c0_12], %12 {strides = array<i32>} : memref<1x8xf32, #tpu.memory_space<vmem>>, vector<1x8xf32>,
    return
  }
  func.func @transform_0(%arg0: i32) -> (i32, i32) {
    %c0_i32 = arith.constant 0 : i32
    %c0_i32_0 = arith.constant 0 : i32
    return %arg0, %c0_i32 : i32, i32
  }
  func.func @transform_1(%arg0: i32) -> (i32, i32) {
    %c0_i32 = arith.constant 0 : i32
    %c0_i32_0 = arith.constant 0 : i32
    %c0_i32_1 = arith.constant 0 : i32
    return %c0_i32, %c0_i32_0 : i32, i32
  }
  func.func @transform_2(%arg0: i32) -> (i32, i32) {
    %c0_i32 = arith.constant 0 : i32
    %c0_i32_0 = arith.constant 0 : i32
    %c0_i32_1 = arith.constant 0 : i32
    return %c0_i32, %c0_i32_0 : i32, i32
  }
  func.func @transform_3(%arg0: i32) -> (i32, i32) {
    %c0_i32 = arith.constant 0 : i32
    %c0_i32_0 = arith.constant 0 : i32
    %c0_i32_1 = arith.constant 0 : i32
    return %c0_i32, %c0_i32_0 : i32, i32
  }
  func.func @transform_4(%arg0: i32) -> (i32, i32) {
    %c0_i32 = arith.constant 0 : i32
    %c0_i32_0 = arith.constant 0 : i32
    %c0_i32_1 = arith.constant 0 : i32
    return %c0_i32, %c0_i32_0 : i32, i32
  }
  func.func @transform_5(%arg0: i32) -> (i32, i32) {
    %c0_i32 = arith.constant 0 : i32
    %c0_i32_0 = arith.constant 0 : i32
    return %c0_i32, %arg0 : i32, i32
  }
}

</mosaic_0001>

<bundles_post_ra>
// kernel: tpu_custom_call.1
= control target key start
LH: loop header
LB: loop body
LE: loop exit
PB: predicated region body
PF: predicated region fallthrough
CT: control target
= control target key end

     0   :  { %s437_s0 = inlined_call_operand.hbm [shape: f32[8,16], index: 0, kind: input, shape index: {}]   ;;  %s438_s1 = inlined_call_operand.hbm [shape: f32[16,32], index: 1, kind: input, shape index: {}]   ;;  %s439_s2 = inlined_call_operand.vmem [shape: f32[1,32], index: 2, kind: input, shape index: {}]   ;;  %s440_s3 = inlined_call_operand.vmem [shape: f32[1,32], index: 3, kind: input, shape index: {}]   ;;  %s441_s4 = inlined_call_operand.<no memory space> [shape: f32[1,1], index: 4, kind: input, shape index: {}]   ;;  %s442_s5 = inlined_call_operand.hbm [shape: f32[1,8], index: 5, kind: output, shape index: {}]  }
   0x1   :  { %v10_v0 = vstv %s441_s4 }
   0x2   :  { %11 = vst [vmem:[#allocation2] sm:$0x1] %v10_v0 }
   0x3   :  { %12 = vsyncpa [#allocation4], 0 }
   0x4   :  { %13 = vsyncpa [#allocation7], 0 }
   0x5   :  { %14 = vsyncpa [#allocation5], 0  ;;  %s346_s20 = smov [#allocation3]   ;;  %s347_s22 = smov [#allocation6]  }
   0x6   :  { %s21_s21 = sshll.u32 %s346_s20, 4  ;;  %s30_s23 = sshll.u32 %s347_s22, 4  ;;  %s22_s21 = int_to_ptr.vmem [resolvable:$true] %s21_s21  ;;  %s388_s23 = int_to_ptr.vmem [resolvable:$true] %s30_s23 }
   0x7   :  { %s274_s26 = scalar_lea.hbm %s437_s0, 128 }
   0x8   :  { %p275_p0 = scmp.ne.s32.totalorder %s437_s0, %s274_s26  ;;  %p278_p1 = scmp.lt.u32.totalorder %s274_s26, %s437_s0 }
   0xa   :  { %p280_p2 = pnand %p278_p1, %p275_p0 }
   0xc   :  { %283 = shalt.err (!%p280_p2)
}
   0xd   :  { %s284_s30 = scalar_lea.vmem %s22_s21, 128  ;;  %p289_p4 = scmp.lt.s32.totalorder %s22_s21, %s22_s21 }
   0xe   :  { %p285_p3 = scmp.ne.s32.totalorder %s22_s21, %s284_s30  ;;  %p290_p5 = scmp.lt.s32.totalorder %s284_s30, %s284_s30 }
  0x10   :  { %p291_p6 = por %p290_p5, %p289_p4 }
  0x12   :  { %p292_p7 = pnand %p291_p6, %p285_p3 }
  0x14   :  { %295 = shalt.err (!%p292_p7)
}
  0x15   :  { %24 = dma.hbm_to_vmem [thread:$0]  %s437_s0, 128, %s22_s21, [#allocation4]  }
  0x16   :  { %s296_s10 = scalar_lea.hbm %s438_s1, 256 }
  0x17   :  { %p297_p8 = scmp.ne.s32.totalorder %s438_s1, %s296_s10  ;;  %p300_p9 = scmp.lt.u32.totalorder %s296_s10, %s438_s1 }
  0x19   :  { %p302_p10 = pnand %p300_p9, %p297_p8 }
  0x1b   :  { %305 = shalt.err (!%p302_p10)
}
  0x1c   :  { %s306_s15 = scalar_lea.vmem %s388_s23, 256  ;;  %p311_p12 = scmp.lt.s32.totalorder %s388_s23, %s388_s23 }
  0x1d   :  { %p307_p11 = scmp.ne.s32.totalorder %s388_s23, %s306_s15  ;;  %p312_p13 = scmp.lt.s32.totalorder %s306_s15, %s306_s15 }
  0x1f   :  { %p313_p0 = por %p312_p13, %p311_p12 }
  0x21   :  { %p314_p1 = pnand %p313_p0, %p307_p11 }
  0x23   :  { %317 = shalt.err (!%p314_p1)
}
  0x24   :  { %s348_s0 = smov 128   ;;  %s349_s16 = smov 8  }
  0x25   :  { %36 = dma.hbm_to_vmem [thread:$0]  %s438_s1, 256, %s388_s23, [#allocation7], %s348_s0, %s348_s0, %s349_s16  }
  0x26   :  { %340 = dma.done.wait [#allocation4], 128  }
  0x27   :  { %341 = vsyncadd [#allocation4], 4294967168 }
  0x28   :  { %342 = dma.done.wait [#allocation7], 256  }
  0x29   :  { %343 = vsyncadd [#allocation7], 4294967040  ;;  %v350_v1 = vmov 0.0|0.0   ;;  %vm351_vm0 = vmmov 0   ;;  %v352_v2 = vmov 0.0   ;;  %v50_v3 = vld [vmem:[#allocation6] sm:$0xff]  ;;  %v141_v15 = vlaneseq }
  0x2a   :  { %261 = vmatprep.subr.bf16.mxu0 %v350_v1  ;;  %253 = vmatprep.mubr.msk.f32.mxu0 %vm351_vm0, %v352_v2  ;;  %v51_v4 = vld [vmem:[#allocation6 + $0x8] sm:$0xff]  ;;  %v49_v6 = vld [vmem:[#allocation3] sm:$0xff]  ;;  %vm59_vm1 = vcmask 130048   ;;  %v135_v7 = vld [vmem:[#allocation2] sm:$0x1]  ;;  %v353_v8 = vmov 0  }
  0x2b   :  { %256 = vmatprep.subr.mxu1 %v352_v2  ;;  %258 = vmatprep.mubr.msk.f32.mxu1 %vm351_vm0, %v352_v2  ;;  %v262_v5 = vpack.c.bf16 %v51_v4, %v50_v3  ;;  %v240_v9 = vld [vmem:[%s439_s2] ss:$0 sm:$0xff]  ;;  %vm145_vm2 = vcmask 261120   ;;  %v142_v16 = vshrl.u32 %v141_v15, 7  ;;  %s354_s22 = smov [#allocation8]   ;;  %vm222_vm3 = vcmask 57344  }
  0x2c   :  { %273 = vset.pattern.permute.xlu0 %v353_v8  ;;  %v134_v14 = vld [vmem:[%s440_s3] sm:$0x1]  ;;  %s230_s23 = sshll.u32 %s354_s22, 4  ;;  %s231_s23 = int_to_ptr.vmem [resolvable:$true] %s230_s23 }
  0x2d   :  { %263 = vmatpush3.bf16.msra.mxu0 %v262_v5  ;;  %138 = vperm.xlu0 %273, %v135_v7   ;;  %v143_v17 = vsub.s32 0, %v142_v16  ;;  %s318_s2 = scalar_lea.vmem %s231_s23, 16  ;;  %s322_s24 = scalar_lea.vmem %s231_s23, 32 }
  0x2e   :  { %p319_p2 = scmp.ne.s32.totalorder %s231_s23, %s318_s2  ;;  %p323_p3 = scmp.lt.s32.totalorder %s231_s23, %s231_s23 }
  0x2f   :  { %p324_p4 = scmp.lt.s32.totalorder %s322_s24, %s318_s2 }
  0x30   :  { %254 = vmatmul.mubr.msk.f32.vlgmr.msra.gmra.mrb[0].mxu0 %vm59_vm1, %v49_v6 }
  0x31   :  { %p325_p5 = por %p324_p4, %p323_p3 }
  0x33   :  { %p326_p6 = pnand %p325_p5, %p319_p2 }
  0xac   :  { %v139_v18 = vpop.permute.xlu0 %138 }
  0xad   :  { %v144_v19 = vrot.slane %v139_v18, %v143_v17 }
 0x103   :  { %v129_v10 = vpop.f32.mrb[0].mxu0 }
 0x104   :  { %v130_v11 = vadd.f32 %v240_v9, %v129_v10  ;;  %v255_v12 = vpop.f32.mrb[1].mxu0 }
 0x106   :  { %v133_v13 = vmax.f32 %v130_v11, 0.0 }
 0x108   :  { %257 = vmatpush3.xpose.msk.msra.mxu1 %vm145_vm2, %v133_v13 }
 0x10b   :  { %259 = vmatmul.mubr.msk.f32.vlgmr.msra.gmra.mrb[0].mxu1 %vm145_vm2, %v134_v14 }
 0x1de   :  { %v218_v20 = vpop.f32.mrb[0].mxu1 }
 0x1df   :  { %v219_v21 = vadd.f32 %v218_v20, %v144_v19  ;;  %v260_v22 = vpop.f32.mrb[1].mxu1 }
 0x1e1   :  { %223 = vst.msk [vmem:[#allocation8] sm:$0x1] %vm222_vm3, %v219_v21 }
 0x1e2   :  { %329 = shalt.err (!%p326_p6)
}
 0x1e3   :  { %s330_s26 = scalar_lea.hbm %s442_s5, 16 }
 0x1e4   :  { %p331_p7 = scmp.ne.s32.totalorder %s442_s5, %s330_s26  ;;  %p334_p8 = scmp.lt.u32.totalorder %s330_s26, %s442_s5 }
 0x1e6   :  { %p336_p9 = pnand %p334_p8, %p331_p7 }
 0x1e8   :  { %339 = shalt.err (!%p336_p9)
}
 0x1e9   :  { %233 = dma.vmem_to_hbm [thread:$0]  %s231_s23, 16, %s442_s5, [#allocation5]  }
 0x1ea   :  { %344 = dma.done.wait [#allocation5], 16  }
 0x1eb   :  { %345 = vsyncadd [#allocation5], 4294967280 }
 0x1ec   :  { %237 = vsyncpa [#allocation4], 1 }
 0x1ed   :  { %238 = vsyncpa [#allocation7], 1 }
 0x1ee   :  { %239 = vsyncpa [#allocation5], 1 }

</bundles_post_ra>
